<compile_context>
chip_gen: v7x
topology: tpu7x:2x2x1
jax: 0.10.0
libtpu: 0.0.40
codegen_flags: <defaults>
</compile_context>

<pallas_src>
import math

import jax
import jax.numpy as jnp
from jax.experimental import pallas as pl
from jax.experimental.pallas import tpu as pltpu

# ---------------------------------------------------------------------------
# Model hyper-parameters (small, consistent with the module's constructor).
# ---------------------------------------------------------------------------
B = 2            # batch_size
S = 8            # seq_len
D = 32           # d_model
H = 4            # num_heads
DH = D // H      # per-head dim
DFF = 64         # d_ffn
R = B * S        # flattened token axis
EPS = 1e-5       # nn.LayerNorm default eps
NEG_INF = -1e9
SCALE = 1.0 / math.sqrt(DH)

# Row offsets inside the packed parameter slab (lane width = 3*D = 96).
_ROW_WQKV = 0                 # rows [0, 32)   : [Wq | Wk | Wv]    (D, 3D)
_ROW_WO = D                   # rows [32, 64)  : Wo                (D, D)
_ROW_W1 = 2 * D               # rows [64, 96)  : W1                (D, DFF)
_ROW_W2 = 3 * D               # rows [96, 160) : W2                (DFF, D)
_ROW_VEC = 3 * D + DFF        # rows [160, 168): packed 1-D params (8, 3D)
_SLAB_ROWS = _ROW_VEC + 8
_SLAB_LANES = 3 * D


# ---------------------------------------------------------------------------
# Kernel: whole encoder block for the flattened (R, D) activation slab.
# ---------------------------------------------------------------------------
def encoder_kernel(x_ref, mask_ref, w_ref, out_ref, attn_ref):
    x = x_ref[...]                                        # (R, D)
    mask = mask_ref[...]                                  # (R, R) additive

    # ---- Static views into the single packed parameter slab ----------------
    wqkv = w_ref[_ROW_WQKV:_ROW_WQKV + D, :]              # (D, 3D)
    w1 = w_ref[_ROW_W1:_ROW_W1 + D, 0:DFF]                # (D, DFF)
    w2 = w_ref[_ROW_W2:_ROW_W2 + DFF, 0:D]                # (DFF, D)
    vec = w_ref[_ROW_VEC:_ROW_VEC + 8, :]                 # (8, 3D)
    bqkv = vec[0:1, :]                                    # (1, 3D)
    bo, b1, b2 = vec[1:2, 0:D], vec[2:3, 0:DFF], vec[3:4, 0:D]
    g1, be1 = vec[4:5, 0:D], vec[5:6, 0:D]
    g2, be2 = vec[6:7, 0:D], vec[7:8, 0:D]

    # ---- Fused QKV projection: one (R,D) @ (D,3D) MXU pass ------------------
    qkv = jnp.dot(x, wqkv, preferred_element_type=jnp.float32) + bqkv  # (R,3D)

    # ---- Per-head attention (statically unrolled over H=4 heads) -----------
    attn_acc = None
    for h in range(H):
        qh = qkv[:, h * DH:(h + 1) * DH]                       # (R, DH)
        kh = qkv[:, D + h * DH:D + (h + 1) * DH]               # (R, DH)
        vh = qkv[:, 2 * D + h * DH:2 * D + (h + 1) * DH]       # (R, DH)

        s = jax.lax.dot_general(
            qh, kh, (((1,), (1,)), ((), ())),
            preferred_element_type=jnp.float32) * SCALE + mask  # (R, R)

        # Exact softmax (returned attention weights sum to 1).
        m = jnp.max(s, axis=-1, keepdims=True)
        e = jnp.exp(s - m)
        p = e / jnp.sum(e, axis=-1, keepdims=True)               # (R, R)

        # Lane-packed attention-weights output: block (b, h) lives at lane
        # offset (b*H + h)*S of the (S, B*H*S) slab (cross-batch entries of p
        # are exactly 0 thanks to the block-diagonal -1e9 mask, so the
        # diagonal blocks are the per-batch attention maps).
        for b in range(B):
            c0 = (b * H + h) * S
            attn_ref[:, c0:c0 + S] = p[b * S:(b + 1) * S, b * S:(b + 1) * S]

        # Context + output projection accumulated per head (no (H,R,D) tmp).
        ctx = jnp.dot(p, vh, preferred_element_type=jnp.float32)       # (R, DH)
        wo_h = w_ref[_ROW_WO + h * DH:_ROW_WO + (h + 1) * DH, 0:D]     # (DH, D)
        proj = jnp.dot(ctx, wo_h, preferred_element_type=jnp.float32)  # (R, D)
        attn_acc = proj if attn_acc is None else attn_acc + proj

    attn_out = attn_acc + bo
    # dropout1: identity (eval mode)

    # ---- Add & LayerNorm 1 ---------------------------------------------------
    h1 = x + attn_out
    mu1 = jnp.mean(h1, axis=-1, keepdims=True)
    var1 = jnp.mean(jnp.square(h1 - mu1), axis=-1, keepdims=True)
    h1 = (h1 - mu1) * jax.lax.rsqrt(var1 + EPS) * g1 + be1

    # ---- FFN: Linear -> ReLU -> (dropout) -> Linear ---------------------------
    f = jnp.dot(h1, w1, preferred_element_type=jnp.float32) + b1
    f = jnp.maximum(f, 0.0)
    f = jnp.dot(f, w2, preferred_element_type=jnp.float32) + b2
    # dropout2: identity (eval mode)

    # ---- Add & LayerNorm 2 -----------------------------------------------------
    h2 = h1 + f
    mu2 = jnp.mean(h2, axis=-1, keepdims=True)
    var2 = jnp.mean(jnp.square(h2 - mu2), axis=-1, keepdims=True)
    out_ref[...] = (h2 - mu2) * jax.lax.rsqrt(var2 + EPS) * g2 + be2


# ---------------------------------------------------------------------------
# Wrapper: parameter packing, mask construction, pallas_call, un-packing.
# ---------------------------------------------------------------------------
def _pack_params(params):
    """Pack all EncoderBlock parameters into one (168, 96) f32 slab."""
    (wq, bq, wk, bk, wv, bv, wo, bo,
     g1, be1, w1, bf1, w2, bf2, g2, be2) = params

    def row(a):
        a = jnp.asarray(a, jnp.float32)
        if a.ndim == 1:
            a = a[None, :]
        return jnp.pad(a, ((0, 0), (0, _SLAB_LANES - a.shape[1])))

    slab = jnp.concatenate([
        jnp.concatenate([wq, wk, wv], axis=1),           # rows [0, 32)
        row(wo),                                         # rows [32, 64)
        row(w1),                                         # rows [64, 96)
        row(w2),                                         # rows [96, 160)
        jnp.concatenate([bq, bk, bv])[None, :],          # row 160
        row(bo), row(bf1), row(bf2),                     # rows 161..163
        row(g1), row(be1), row(g2), row(be2),            # rows 164..167
    ], axis=0).astype(jnp.float32)
    assert slab.shape == (_SLAB_ROWS, _SLAB_LANES)
    return slab


def encoder_block(x, src_mask, params):
    """x: (B, S, D) f32, src_mask: (B, S, S) f32 (1 = attend / 0 = mask)."""
    w_slab = _pack_params(params)

    # Block-diagonal ADDITIVE mask over the flattened (B*S) token axis, so the
    # whole batch runs as one attention slab; cross-batch logits get -1e9 and
    # underflow to exactly 0 after the softmax.
    madd = jnp.where(src_mask > 0.0, 0.0, NEG_INF).astype(jnp.float32)  # (B,S,S)
    mask_full = jnp.full((R, R), NEG_INF, jnp.float32)
    for b in range(B):
        mask_full = mask_full.at[b * S:(b + 1) * S, b * S:(b + 1) * S].set(madd[b])

    x2 = x.reshape(R, D).astype(jnp.float32)

    vmem = pl.BlockSpec(memory_space=pltpu.MemorySpace.VMEM)
    out2, attn_flat = pl.pallas_call(
        encoder_kernel,
        out_shape=[
            jax.ShapeDtypeStruct((R, D), jnp.float32),          # block output
            jax.ShapeDtypeStruct((S, B * H * S), jnp.float32),  # attn, lane-packed
        ],
        in_specs=[vmem, vmem, vmem],
        out_specs=[vmem, vmem],
    )(x2, mask_full, w_slab)

    out = out2.reshape(B, S, D)
    # (S, B*H*S) -> (B, H, S, S): column index is (b*H + h)*S + s'.
    attn = attn_flat.reshape(S, B, H, S).transpose(1, 2, 0, 3)
    return out, attn


# ---------------------------------------------------------------------------
# Pure-JAX reference (uses the ORIGINAL, unpacked parameters).
# ---------------------------------------------------------------------------
def reference(x, mask, params):
    (wq, bq, wk, bk, wv, bv, wo, bo,
     g1, be1, w1, bf1, w2, bf2, g2, be2) = params

    def ln(h, g, b):
        mu = jnp.mean(h, -1, keepdims=True)
        var = jnp.mean((h - mu) ** 2, -1, keepdims=True)
        return (h - mu) / jnp.sqrt(var + EPS) * g + b

    q = (x @ wq + bq).reshape(B, S, H, DH).transpose(0, 2, 1, 3)
    k = (x @ wk + bk).reshape(B, S, H, DH).transpose(0, 2, 1, 3)
    v = (x @ wv + bv).reshape(B, S, H, DH).transpose(0, 2, 1, 3)
    s = jnp.einsum("bhqd,bhkd->bhqk", q, k) / math.sqrt(DH)
    s = jnp.where(mask[:, None, :, :] > 0.0, s, NEG_INF)
    p = jax.nn.softmax(s, axis=-1)
    ctx = jnp.einsum("bhqk,bhkd->bhqd", p, v).transpose(0, 2, 1, 3).reshape(B, S, D)
    attn_out = ctx @ wo + bo
    h1 = ln(x + attn_out, g1, be1)
    f = jnp.maximum(h1 @ w1 + bf1, 0.0) @ w2 + bf2
    return ln(h1 + f, g2, be2), p


if __name__ == "__main__":
    key = jax.random.PRNGKey(0)
    keys = jax.random.split(key, 12)

    x = jax.random.normal(keys[0], (B, S, D), dtype=jnp.float32)

    # Padding mask: batch 0 attends to all 8 positions, batch 1 to first 5.
    lens = jnp.array([8, 5])
    col = jnp.arange(S)[None, None, :]                           # (1, 1, S)
    src_mask = (col < lens[:, None, None]).astype(jnp.float32)   # (B, 1, S)
    src_mask = jnp.broadcast_to(src_mask, (B, S, S))

    def lin_init(k, fan_in, fan_out):
        bound = 1.0 / math.sqrt(fan_in)
        kw, kb = jax.random.split(k)
        w = jax.random.uniform(kw, (fan_in, fan_out), jnp.float32, -bound, bound)
        b = jax.random.uniform(kb, (fan_out,), jnp.float32, -bound, bound)
        return w, b

    wq, bq = lin_init(keys[1], D, D)
    wk, bk = lin_init(keys[2], D, D)
    wv, bv = lin_init(keys[3], D, D)
    wo, bo = lin_init(keys[4], D, D)
    w1, bf1 = lin_init(keys[5], D, DFF)
    w2, bf2 = lin_init(keys[6], DFF, D)
    g1, be1 = jnp.ones((D,), jnp.float32), jnp.zeros((D,), jnp.float32)
    g2, be2 = jnp.ones((D,), jnp.float32), jnp.zeros((D,), jnp.float32)

    params = (wq, bq, wk, bk, wv, bv, wo, bo,
              g1, be1, w1, bf1, w2, bf2, g2, be2)

    out, attn = encoder_block(x, src_mask, params)
    out = jax.block_until_ready(out)
    attn = jax.block_until_ready(attn)

    ref_out, ref_attn = reference(x, src_mask, params)
    assert out.shape == (B, S, D) and attn.shape == (B, H, S, S)
    # Tolerance budgets for the TPU MXU's default handling of f32 matmuls
    # (bf16 passes), whose accumulation order / pass count can differ between
    # the fused Mosaic kernel and the XLA reference.
    assert jnp.allclose(out, ref_out, atol=1e-2, rtol=1e-2)
    assert jnp.allclose(attn, ref_attn, atol=1e-2, rtol=1e-2)

    print("KERNEL_OK")
</pallas_src>

<mosaic_0001>
module attributes {stable_mosaic.version = 11 : i64} {
  func.func @encoder_kernel(%arg0: memref<16x32xf32, #tpu.memory_space<vmem>>, %arg1: memref<16x16xf32, #tpu.memory_space<vmem>>, %arg2: memref<168x96xf32, #tpu.memory_space<vmem>>, %arg3: memref<16x32xf32, #tpu.memory_space<vmem>>, %arg4: memref<8x64xf32, #tpu.memory_space<vmem>>) attributes {dimension_semantics = [], scalar_prefetch = 0 : i64, scratch_operands = 0 : i64, tpu.core_type = #tpu.core_type<tc>} {
    %c0 = arith.constant 0 : index
    %c0_0 = arith.constant 0 : index
    %0 = vector.load %arg0[%c0, %c0_0] : memref<16x32xf32, #tpu.memory_space<vmem>>, vector<16x32xf32>
    %c0_1 = arith.constant 0 : index
    %c0_2 = arith.constant 0 : index
    %1 = vector.load %arg1[%c0_1, %c0_2] : memref<16x16xf32, #tpu.memory_space<vmem>>, vector<16x16xf32>
    %c0_3 = arith.constant 0 : index
    %c0_4 = arith.constant 0 : index
    %2 = vector.load %arg2[%c0_3, %c0_4] : memref<168x96xf32, #tpu.memory_space<vmem>>, vector<32x96xf32>
    %c64 = arith.constant 64 : index
    %c0_5 = arith.constant 0 : index
    %3 = vector.load %arg2[%c64, %c0_5] : memref<168x96xf32, #tpu.memory_space<vmem>>, vector<32x64xf32>
    %c96 = arith.constant 96 : index
    %c0_6 = arith.constant 0 : index
    %4 = vector.load %arg2[%c96, %c0_6] : memref<168x96xf32, #tpu.memory_space<vmem>>, vector<64x32xf32>
    %c160 = arith.constant 160 : index
    %c0_7 = arith.constant 0 : index
    %5 = vector.load %arg2[%c160, %c0_7] : memref<168x96xf32, #tpu.memory_space<vmem>>, vector<8x96xf32>
    %6 = vector.extract_strided_slice %5 {offsets = [0, 0], sizes = [1, 96], strides = [1, 1]} : vector<8x96xf32> to vector<1x96xf32>
    %7 = vector.extract_strided_slice %5 {offsets = [1, 0], sizes = [1, 32], strides = [1, 1]} : vector<8x96xf32> to vector<1x32xf32>
    %8 = vector.extract_strided_slice %5 {offsets = [2, 0], sizes = [1, 64], strides = [1, 1]} : vector<8x96xf32> to vector<1x64xf32>
    %9 = vector.extract_strided_slice %5 {offsets = [3, 0], sizes = [1, 32], strides = [1, 1]} : vector<8x96xf32> to vector<1x32xf32>
    %10 = vector.extract_strided_slice %5 {offsets = [4, 0], sizes = [1, 32], strides = [1, 1]} : vector<8x96xf32> to vector<1x32xf32>
    %11 = vector.extract_strided_slice %5 {offsets = [5, 0], sizes = [1, 32], strides = [1, 1]} : vector<8x96xf32> to vector<1x32xf32>
    %12 = vector.extract_strided_slice %5 {offsets = [6, 0], sizes = [1, 32], strides = [1, 1]} : vector<8x96xf32> to vector<1x32xf32>
    %13 = vector.extract_strided_slice %5 {offsets = [7, 0], sizes = [1, 32], strides = [1, 1]} : vector<8x96xf32> to vector<1x32xf32>
    %cst = arith.constant dense<0.000000e+00> : vector<16x96xf32>
    %14 = tpu.matmul %0, %2, %cst {dimension_numbers = #tpu.dot_dimension_numbers<[1], [0], [0], [1], [0, 0, 1, 1], [], []>} : vector<16x32xf32>, vector<32x96xf32>, vector<16x96xf32> -> vector<16x96xf32>
    %15 = vector.broadcast %6 : vector<1x96xf32> to vector<16x96xf32>
    %16 = arith.addf %14, %15 : vector<16x96xf32>
    %17 = vector.extract_strided_slice %16 {offsets = [0, 0], sizes = [16, 8], strides = [1, 1]} : vector<16x96xf32> to vector<16x8xf32>
    %18 = vector.extract_strided_slice %16 {offsets = [0, 32], sizes = [16, 8], strides = [1, 1]} : vector<16x96xf32> to vector<16x8xf32>
    %19 = vector.extract_strided_slice %16 {offsets = [0, 64], sizes = [16, 8], strides = [1, 1]} : vector<16x96xf32> to vector<16x8xf32>
    %cst_8 = arith.constant dense<0.000000e+00> : vector<16x16xf32>
    %20 = tpu.matmul %17, %18, %cst_8 {dimension_numbers = #tpu.dot_dimension_numbers<[1], [1], [0], [0], [0, 0, 1, 0], [], []>} : vector<16x8xf32>, vector<16x8xf32>, vector<16x16xf32> -> vector<16x16xf32>
    %cst_9 = arith.constant 0.353553385 : f32
    %21 = vector.broadcast %cst_9 : f32 to vector<16x16xf32>
    %22 = arith.mulf %20, %21 : vector<16x16xf32>
    %23 = arith.addf %22, %1 : vector<16x16xf32>
    %cst_10 = arith.constant dense<0xFF800000> : vector<16xf32>
    %24 = vector.multi_reduction <maximumf>, %23, %cst_10 [1] : vector<16x16xf32> to vector<16xf32>
    %25 = vector.shape_cast %24 : vector<16xf32> to vector<16x1xf32>
    %26 = vector.broadcast %25 : vector<16x1xf32> to vector<16x16xf32>
    %27 = arith.subf %23, %26 : vector<16x16xf32>
    %28 = math.exp %27 : vector<16x16xf32>
    %cst_11 = arith.constant dense<0.000000e+00> : vector<16xf32>
    %29 = vector.multi_reduction <add>, %28, %cst_11 [1] : vector<16x16xf32> to vector<16xf32>
    %30 = vector.shape_cast %29 : vector<16xf32> to vector<16x1xf32>
    %31 = vector.broadcast %30 : vector<16x1xf32> to vector<16x16xf32>
    %32 = arith.divf %28, %31 : vector<16x16xf32>
    %33 = vector.extract_strided_slice %32 {offsets = [0, 0], sizes = [8, 8], strides = [1, 1]} : vector<16x16xf32> to vector<8x8xf32>
    %c0_12 = arith.constant 0 : index
    %c0_13 = arith.constant 0 : index
    %34 = vector.load %arg4[%c0_12, %c0_13] : memref<8x64xf32, #tpu.memory_space<vmem>>, vector<8x8xf32>
    tpu.vector_store %arg4[%c0_12, %c0_13], %33 {strides = array<i32>} : memref<8x64xf32, #tpu.memory_space<vmem>>, vector<8x8xf32>,
    %35 = vector.extract_strided_slice %32 {offsets = [8, 8], sizes = [8, 8], strides = [1, 1]} : vector<16x16xf32> to vector<8x8xf32>
    %c0_14 = arith.constant 0 : index
    %c32 = arith.constant 32 : index
    %36 = vector.load %arg4[%c0_14, %c32] : memref<8x64xf32, #tpu.memory_space<vmem>>, vector<8x8xf32>
    tpu.vector_store %arg4[%c0_14, %c32], %35 {strides = array<i32>} : memref<8x64xf32, #tpu.memory_space<vmem>>, vector<8x8xf32>,
    %cst_15 = arith.constant dense<0.000000e+00> : vector<16x8xf32>
    %37 = tpu.matmul %32, %19, %cst_15 {dimension_numbers = #tpu.dot_dimension_numbers<[1], [0], [0], [1], [0, 0, 1, 1], [], []>} : vector<16x16xf32>, vector<16x8xf32>, vector<16x8xf32> -> vector<16x8xf32>
    %c32_16 = arith.constant 32 : index
    %c0_17 = arith.constant 0 : index
    %38 = vector.load %arg2[%c32_16, %c0_17] : memref<168x96xf32, #tpu.memory_space<vmem>>, vector<8x32xf32>
    %cst_18 = arith.constant dense<0.000000e+00> : vector<16x32xf32>
    %39 = tpu.matmul %37, %38, %cst_18 {dimension_numbers = #tpu.dot_dimension_numbers<[1], [0], [0], [1], [0, 0, 1, 1], [], []>} : vector<16x8xf32>, vector<8x32xf32>, vector<16x32xf32> -> vector<16x32xf32>
    %40 = vector.extract_strided_slice %16 {offsets = [0, 8], sizes = [16, 8], strides = [1, 1]} : vector<16x96xf32> to vector<16x8xf32>
    %41 = vector.extract_strided_slice %16 {offsets = [0, 40], sizes = [16, 8], strides = [1, 1]} : vector<16x96xf32> to vector<16x8xf32>
    %42 = vector.extract_strided_slice %16 {offsets = [0, 72], sizes = [16, 8], strides = [1, 1]} : vector<16x96xf32> to vector<16x8xf32>
    %cst_19 = arith.constant dense<0.000000e+00> : vector<16x16xf32>
    %43 = tpu.matmul %40, %41, %cst_19 {dimension_numbers = #tpu.dot_dimension_numbers<[1], [1], [0], [0], [0, 0, 1, 0], [], []>} : vector<16x8xf32>, vector<16x8xf32>, vector<16x16xf32> -> vector<16x16xf32>
    %cst_20 = arith.constant 0.353553385 : f32
    %44 = vector.broadcast %cst_20 : f32 to vector<16x16xf32>
    %45 = arith.mulf %43, %44 : vector<16x16xf32>
    %46 = arith.addf %45, %1 : vector<16x16xf32>
    %cst_21 = arith.constant dense<0xFF800000> : vector<16xf32>
    %47 = vector.multi_reduction <maximumf>, %46, %cst_21 [1] : vector<16x16xf32> to vector<16xf32>
    %48 = vector.shape_cast %47 : vector<16xf32> to vector<16x1xf32>
    %49 = vector.broadcast %48 : vector<16x1xf32> to vector<16x16xf32>
    %50 = arith.subf %46, %49 : vector<16x16xf32>
    %51 = math.exp %50 : vector<16x16xf32>
    %cst_22 = arith.constant dense<0.000000e+00> : vector<16xf32>
    %52 = vector.multi_reduction <add>, %51, %cst_22 [1] : vector<16x16xf32> to vector<16xf32>
    %53 = vector.shape_cast %52 : vector<16xf32> to vector<16x1xf32>
    %54 = vector.broadcast %53 : vector<16x1xf32> to vector<16x16xf32>
    %55 = arith.divf %51, %54 : vector<16x16xf32>
    %56 = vector.extract_strided_slice %55 {offsets = [0, 0], sizes = [8, 8], strides = [1, 1]} : vector<16x16xf32> to vector<8x8xf32>
    %c0_23 = arith.constant 0 : index
    %c8 = arith.constant 8 : index
    %57 = vector.load %arg4[%c0_23, %c8] : memref<8x64xf32, #tpu.memory_space<vmem>>, vector<8x8xf32>
    tpu.vector_store %arg4[%c0_23, %c8], %56 {strides = array<i32>} : memref<8x64xf32, #tpu.memory_space<vmem>>, vector<8x8xf32>,
    %58 = vector.extract_strided_slice %55 {offsets = [8, 8], sizes = [8, 8], strides = [1, 1]} : vector<16x16xf32> to vector<8x8xf32>
    %c0_24 = arith.constant 0 : index
    %c40 = arith.constant 40 : index
    %59 = vector.load %arg4[%c0_24, %c40] : memref<8x64xf32, #tpu.memory_space<vmem>>, vector<8x8xf32>
    tpu.vector_store %arg4[%c0_24, %c40], %58 {strides = array<i32>} : memref<8x64xf32, #tpu.memory_space<vmem>>, vector<8x8xf32>,
    %cst_25 = arith.constant dense<0.000000e+00> : vector<16x8xf32>
    %60 = tpu.matmul %55, %42, %cst_25 {dimension_numbers = #tpu.dot_dimension_numbers<[1], [0], [0], [1], [0, 0, 1, 1], [], []>} : vector<16x16xf32>, vector<16x8xf32>, vector<16x8xf32> -> vector<16x8xf32>
    %c40_26 = arith.constant 40 : index
    %c0_27 = arith.constant 0 : index
    %61 = vector.load %arg2[%c40_26, %c0_27] : memref<168x96xf32, #tpu.memory_space<vmem>>, vector<8x32xf32>
    %cst_28 = arith.constant dense<0.000000e+00> : vector<16x32xf32>
    %62 = tpu.matmul %60, %61, %cst_28 {dimension_numbers = #tpu.dot_dimension_numbers<[1], [0], [0], [1], [0, 0, 1, 1], [], []>} : vector<16x8xf32>, vector<8x32xf32>, vector<16x32xf32> -> vector<16x32xf32>
    %63 = arith.addf %39, %62 : vector<16x32xf32>
    %64 = vector.extract_strided_slice %16 {offsets = [0, 16], sizes = [16, 8], strides = [1, 1]} : vector<16x96xf32> to vector<16x8xf32>
    %65 = vector.extract_strided_slice %16 {offsets = [0, 48], sizes = [16, 8], strides = [1, 1]} : vector<16x96xf32> to vector<16x8xf32>
    %66 = vector.extract_strided_slice %16 {offsets = [0, 80], sizes = [16, 8], strides = [1, 1]} : vector<16x96xf32> to vector<16x8xf32>
    %cst_29 = arith.constant dense<0.000000e+00> : vector<16x16xf32>
    %67 = tpu.matmul %64, %65, %cst_29 {dimension_numbers = #tpu.dot_dimension_numbers<[1], [1], [0], [0], [0, 0, 1, 0], [], []>} : vector<16x8xf32>, vector<16x8xf32>, vector<16x16xf32> -> vector<16x16xf32>
    %cst_30 = arith.constant 0.353553385 : f32
    %68 = vector.broadcast %cst_30 : f32 to vector<16x16xf32>
    %69 = arith.mulf %67, %68 : vector<16x16xf32>
    %70 = arith.addf %69, %1 : vector<16x16xf32>
    %cst_31 = arith.constant dense<0xFF800000> : vector<16xf32>
    %71 = vector.multi_reduction <maximumf>, %70, %cst_31 [1] : vector<16x16xf32> to vector<16xf32>
    %72 = vector.shape_cast %71 : vector<16xf32> to vector<16x1xf32>
    %73 = vector.broadcast %72 : vector<16x1xf32> to vector<16x16xf32>
    %74 = arith.subf %70, %73 : vector<16x16xf32>
    %75 = math.exp %74 : vector<16x16xf32>
    %cst_32 = arith.constant dense<0.000000e+00> : vector<16xf32>
    %76 = vector.multi_reduction <add>, %75, %cst_32 [1] : vector<16x16xf32> to vector<16xf32>
    %77 = vector.shape_cast %76 : vector<16xf32> to vector<16x1xf32>
    %78 = vector.broadcast %77 : vector<16x1xf32> to vector<16x16xf32>
    %79 = arith.divf %75, %78 : vector<16x16xf32>
    %80 = vector.extract_strided_slice %79 {offsets = [0, 0], sizes = [8, 8], strides = [1, 1]} : vector<16x16xf32> to vector<8x8xf32>
    %c0_33 = arith.constant 0 : index
    %c16 = arith.constant 16 : index
    %81 = vector.load %arg4[%c0_33, %c16] : memref<8x64xf32, #tpu.memory_space<vmem>>, vector<8x8xf32>
    tpu.vector_store %arg4[%c0_33, %c16], %80 {strides = array<i32>} : memref<8x64xf32, #tpu.memory_space<vmem>>, vector<8x8xf32>,
    %82 = vector.extract_strided_slice %79 {offsets = [8, 8], sizes = [8, 8], strides = [1, 1]} : vector<16x16xf32> to vector<8x8xf32>
    %c0_34 = arith.constant 0 : index
    %c48 = arith.constant 48 : index
    %83 = vector.load %arg4[%c0_34, %c48] : memref<8x64xf32, #tpu.memory_space<vmem>>, vector<8x8xf32>
    tpu.vector_store %arg4[%c0_34, %c48], %82 {strides = array<i32>} : memref<8x64xf32, #tpu.memory_space<vmem>>, vector<8x8xf32>,
    %cst_35 = arith.constant dense<0.000000e+00> : vector<16x8xf32>
    %84 = tpu.matmul %79, %66, %cst_35 {dimension_numbers = #tpu.dot_dimension_numbers<[1], [0], [0], [1], [0, 0, 1, 1], [], []>} : vector<16x16xf32>, vector<16x8xf32>, vector<16x8xf32> -> vector<16x8xf32>
    %c48_36 = arith.constant 48 : index
    %c0_37 = arith.constant 0 : index
    %85 = vector.load %arg2[%c48_36, %c0_37] : memref<168x96xf32, #tpu.memory_space<vmem>>, vector<8x32xf32>
    %cst_38 = arith.constant dense<0.000000e+00> : vector<16x32xf32>
    %86 = tpu.matmul %84, %85, %cst_38 {dimension_numbers = #tpu.dot_dimension_numbers<[1], [0], [0], [1], [0, 0, 1, 1], [], []>} : vector<16x8xf32>, vector<8x32xf32>, vector<16x32xf32> -> vector<16x32xf32>
    %87 = arith.addf %63, %86 : vector<16x32xf32>
    %88 = vector.extract_strided_slice %16 {offsets = [0, 24], sizes = [16, 8], strides = [1, 1]} : vector<16x96xf32> to vector<16x8xf32>
    %89 = vector.extract_strided_slice %16 {offsets = [0, 56], sizes = [16, 8], strides = [1, 1]} : vector<16x96xf32> to vector<16x8xf32>
    %90 = vector.extract_strided_slice %16 {offsets = [0, 88], sizes = [16, 8], strides = [1, 1]} : vector<16x96xf32> to vector<16x8xf32>
    %cst_39 = arith.constant dense<0.000000e+00> : vector<16x16xf32>
    %91 = tpu.matmul %88, %89, %cst_39 {dimension_numbers = #tpu.dot_dimension_numbers<[1], [1], [0], [0], [0, 0, 1, 0], [], []>} : vector<16x8xf32>, vector<16x8xf32>, vector<16x16xf32> -> vector<16x16xf32>
    %cst_40 = arith.constant 0.353553385 : f32
    %92 = vector.broadcast %cst_40 : f32 to vector<16x16xf32>
    %93 = arith.mulf %91, %92 : vector<16x16xf32>
    %94 = arith.addf %93, %1 : vector<16x16xf32>
    %cst_41 = arith.constant dense<0xFF800000> : vector<16xf32>
    %95 = vector.multi_reduction <maximumf>, %94, %cst_41 [1] : vector<16x16xf32> to vector<16xf32>
    %96 = vector.shape_cast %95 : vector<16xf32> to vector<16x1xf32>
    %97 = vector.broadcast %96 : vector<16x1xf32> to vector<16x16xf32>
    %98 = arith.subf %94, %97 : vector<16x16xf32>
    %99 = math.exp %98 : vector<16x16xf32>
    %cst_42 = arith.constant dense<0.000000e+00> : vector<16xf32>
    %100 = vector.multi_reduction <add>, %99, %cst_42 [1] : vector<16x16xf32> to vector<16xf32>
    %101 = vector.shape_cast %100 : vector<16xf32> to vector<16x1xf32>
    %102 = vector.broadcast %101 : vector<16x1xf32> to vector<16x16xf32>
    %103 = arith.divf %99, %102 : vector<16x16xf32>
    %104 = vector.extract_strided_slice %103 {offsets = [0, 0], sizes = [8, 8], strides = [1, 1]} : vector<16x16xf32> to vector<8x8xf32>
    %c0_43 = arith.constant 0 : index
    %c24 = arith.constant 24 : index
    %105 = vector.load %arg4[%c0_43, %c24] : memref<8x64xf32, #tpu.memory_space<vmem>>, vector<8x8xf32>
    tpu.vector_store %arg4[%c0_43, %c24], %104 {strides = array<i32>} : memref<8x64xf32, #tpu.memory_space<vmem>>, vector<8x8xf32>,
    %106 = vector.extract_strided_slice %103 {offsets = [8, 8], sizes = [8, 8], strides = [1, 1]} : vector<16x16xf32> to vector<8x8xf32>
    %c0_44 = arith.constant 0 : index
    %c56 = arith.constant 56 : index
    %107 = vector.load %arg4[%c0_44, %c56] : memref<8x64xf32, #tpu.memory_space<vmem>>, vector<8x8xf32>
    tpu.vector_store %arg4[%c0_44, %c56], %106 {strides = array<i32>} : memref<8x64xf32, #tpu.memory_space<vmem>>, vector<8x8xf32>,
    %cst_45 = arith.constant dense<0.000000e+00> : vector<16x8xf32>
    %108 = tpu.matmul %103, %90, %cst_45 {dimension_numbers = #tpu.dot_dimension_numbers<[1], [0], [0], [1], [0, 0, 1, 1], [], []>} : vector<16x16xf32>, vector<16x8xf32>, vector<16x8xf32> -> vector<16x8xf32>
    %c56_46 = arith.constant 56 : index
    %c0_47 = arith.constant 0 : index
    %109 = vector.load %arg2[%c56_46, %c0_47] : memref<168x96xf32, #tpu.memory_space<vmem>>, vector<8x32xf32>
    %cst_48 = arith.constant dense<0.000000e+00> : vector<16x32xf32>
    %110 = tpu.matmul %108, %109, %cst_48 {dimension_numbers = #tpu.dot_dimension_numbers<[1], [0], [0], [1], [0, 0, 1, 1], [], []>} : vector<16x8xf32>, vector<8x32xf32>, vector<16x32xf32> -> vector<16x32xf32>
    %111 = arith.addf %87, %110 : vector<16x32xf32>
    %112 = vector.broadcast %7 : vector<1x32xf32> to vector<16x32xf32>
    %113 = arith.addf %111, %112 : vector<16x32xf32>
    %114 = arith.addf %0, %113 : vector<16x32xf32>
    %cst_49 = arith.constant dense<0.000000e+00> : vector<16xf32>
    %115 = vector.multi_reduction <add>, %114, %cst_49 [1] : vector<16x32xf32> to vector<16xf32>
    %116 = vector.shape_cast %115 : vector<16xf32> to vector<16x1xf32>
    %cst_50 = arith.constant 3.200000e+01 : f32
    %117 = vector.broadcast %cst_50 : f32 to vector<16x1xf32>
    %118 = arith.divf %116, %117 : vector<16x1xf32>
    %119 = vector.broadcast %118 : vector<16x1xf32> to vector<16x32xf32>
    %120 = arith.subf %114, %119 : vector<16x32xf32>
    %121 = arith.mulf %120, %120 : vector<16x32xf32>
    %cst_51 = arith.constant dense<0.000000e+00> : vector<16xf32>
    %122 = vector.multi_reduction <add>, %121, %cst_51 [1] : vector<16x32xf32> to vector<16xf32>
    %123 = vector.shape_cast %122 : vector<16xf32> to vector<16x1xf32>
    %cst_52 = arith.constant 3.200000e+01 : f32
    %124 = vector.broadcast %cst_52 : f32 to vector<16x1xf32>
    %125 = arith.divf %123, %124 : vector<16x1xf32>
    %126 = vector.broadcast %118 : vector<16x1xf32> to vector<16x32xf32>
    %127 = arith.subf %114, %126 : vector<16x32xf32>
    %cst_53 = arith.constant 9.99999974E-6 : f32
    %128 = vector.broadcast %cst_53 : f32 to vector<16x1xf32>
    %129 = arith.addf %125, %128 : vector<16x1xf32>
    %130 = math.rsqrt %129 : vector<16x1xf32>
    %131 = vector.broadcast %130 : vector<16x1xf32> to vector<16x32xf32>
    %132 = arith.mulf %127, %131 : vector<16x32xf32>
    %133 = vector.broadcast %10 : vector<1x32xf32> to vector<16x32xf32>
    %134 = arith.mulf %132, %133 : vector<16x32xf32>
    %135 = vector.broadcast %11 : vector<1x32xf32> to vector<16x32xf32>
    %136 = arith.addf %134, %135 : vector<16x32xf32>
    %cst_54 = arith.constant dense<0.000000e+00> : vector<16x64xf32>
    %137 = tpu.matmul %136, %3, %cst_54 {dimension_numbers = #tpu.dot_dimension_numbers<[1], [0], [0], [1], [0, 0, 1, 1], [], []>} : vector<16x32xf32>, vector<32x64xf32>, vector<16x64xf32> -> vector<16x64xf32>
    %138 = vector.broadcast %8 : vector<1x64xf32> to vector<16x64xf32>
    %139 = arith.addf %137, %138 : vector<16x64xf32>
    %cst_55 = arith.constant 0.000000e+00 : f32
    %140 = vector.broadcast %cst_55 : f32 to vector<16x64xf32>
    %141 = arith.maximumf %139, %140 : vector<16x64xf32>
    %cst_56 = arith.constant dense<0.000000e+00> : vector<16x32xf32>
    %142 = tpu.matmul %141, %4, %cst_56 {dimension_numbers = #tpu.dot_dimension_numbers<[1], [0], [0], [1], [0, 0, 1, 1], [], []>} : vector<16x64xf32>, vector<64x32xf32>, vector<16x32xf32> -> vector<16x32xf32>
    %143 = vector.broadcast %9 : vector<1x32xf32> to vector<16x32xf32>
    %144 = arith.addf %142, %143 : vector<16x32xf32>
    %145 = arith.addf %136, %144 : vector<16x32xf32>
    %cst_57 = arith.constant dense<0.000000e+00> : vector<16xf32>
    %146 = vector.multi_reduction <add>, %145, %cst_57 [1] : vector<16x32xf32> to vector<16xf32>
    %147 = vector.shape_cast %146 : vector<16xf32> to vector<16x1xf32>
    %cst_58 = arith.constant 3.200000e+01 : f32
    %148 = vector.broadcast %cst_58 : f32 to vector<16x1xf32>
    %149 = arith.divf %147, %148 : vector<16x1xf32>
    %150 = vector.broadcast %149 : vector<16x1xf32> to vector<16x32xf32>
    %151 = arith.subf %145, %150 : vector<16x32xf32>
    %152 = arith.mulf %151, %151 : vector<16x32xf32>
    %cst_59 = arith.constant dense<0.000000e+00> : vector<16xf32>
    %153 = vector.multi_reduction <add>, %152, %cst_59 [1] : vector<16x32xf32> to vector<16xf32>
    %154 = vector.shape_cast %153 : vector<16xf32> to vector<16x1xf32>
    %cst_60 = arith.constant 3.200000e+01 : f32
    %155 = vector.broadcast %cst_60 : f32 to vector<16x1xf32>
    %156 = arith.divf %154, %155 : vector<16x1xf32>
    %157 = vector.broadcast %149 : vector<16x1xf32> to vector<16x32xf32>
    %158 = arith.subf %145, %157 : vector<16x32xf32>
    %cst_61 = arith.constant 9.99999974E-6 : f32
    %159 = vector.broadcast %cst_61 : f32 to vector<16x1xf32>
    %160 = arith.addf %156, %159 : vector<16x1xf32>
    %161 = math.rsqrt %160 : vector<16x1xf32>
    %162 = vector.broadcast %161 : vector<16x1xf32> to vector<16x32xf32>
    %163 = arith.mulf %158, %162 : vector<16x32xf32>
    %164 = vector.broadcast %12 : vector<1x32xf32> to vector<16x32xf32>
    %165 = arith.mulf %163, %164 : vector<16x32xf32>
    %166 = vector.broadcast %13 : vector<1x32xf32> to vector<16x32xf32>
    %167 = arith.addf %165, %166 : vector<16x32xf32>
    %c0_62 = arith.constant 0 : index
    %c0_63 = arith.constant 0 : index
    %168 = vector.load %arg3[%c0_62, %c0_63] : memref<16x32xf32, #tpu.memory_space<vmem>>, vector<16x32xf32>
    tpu.vector_store %arg3[%c0_62, %c0_63], %167 {strides = array<i32>} : memref<16x32xf32, #tpu.memory_space<vmem>>, vector<16x32xf32>,
    return
  }
}

</mosaic_0001>

<bundles_post_ra>
// kernel: tpu_custom_call.1
= control target key start
LH: loop header
LB: loop body
LE: loop exit
PB: predicated region body
PF: predicated region fallthrough
CT: control target
= control target key end

     0   :  { %10 = vsyncpa [#allocation3], 0  ;;  %s2466_s0 = inlined_call_operand.hbm [shape: f32[16,32], index: 0, kind: input, shape index: {}]   ;;  %s2467_s1 = inlined_call_operand.hbm [shape: f32[16,16], index: 1, kind: input, shape index: {}]   ;;  %s2468_s2 = inlined_call_operand.hbm [shape: f32[168,96], index: 2, kind: input, shape index: {}]   ;;  %s2469_s3 = inlined_call_operand.hbm [shape: f32[16,32], index: 3, kind: output, shape index: {0}]   ;;  %s2470_s4 = inlined_call_operand.hbm [shape: f32[8,64], index: 4, kind: output, shape index: {1}]  }
   0x1   :  { %11 = vsyncpa [#allocation6], 0 }
   0x2   :  { %12 = vsyncpa [#allocation4], 0 }
   0x3   :  { %13 = vsyncpa [#allocation10], 0  ;;  %s2162_s15 = smov [#allocation5]   ;;  %s2163_s17 = smov [#allocation2]  }
   0x4   :  { %s31_s16 = sshll.u32 %s2162_s15, 4  ;;  %s19_s18 = sshll.u32 %s2163_s17, 4  ;;  %s32_s16 = int_to_ptr.vmem [resolvable:$true] %s31_s16  ;;  %s2208_s18 = int_to_ptr.vmem [resolvable:$true] %s19_s18 }
   0x5   :  { %s2044_s21 = scalar_lea.hbm %s2467_s1, 256 }
   0x6   :  { %p2045_p0 = scmp.ne.s32.totalorder %s2467_s1, %s2044_s21  ;;  %p2048_p1 = scmp.lt.u32.totalorder %s2044_s21, %s2467_s1 }
   0x8   :  { %p2050_p2 = pnand %p2048_p1, %p2045_p0 }
   0xa   :  { %2053 = shalt.err (!%p2050_p2)
}
   0xb   :  { %s2054_s26 = scalar_lea.vmem %s32_s16, 256  ;;  %p2059_p4 = scmp.lt.s32.totalorder %s32_s16, %s32_s16 }
   0xc   :  { %p2055_p3 = scmp.ne.s32.totalorder %s32_s16, %s2054_s26  ;;  %p2060_p5 = scmp.lt.s32.totalorder %s2054_s26, %s2054_s26 }
   0xe   :  { %p2061_p6 = por %p2060_p5, %p2059_p4 }
  0x10   :  { %p2062_p7 = pnand %p2061_p6, %p2055_p3 }
  0x12   :  { %2065 = shalt.err (!%p2062_p7)
}
  0x13   :  { %s2164_s27 = smov 128   ;;  %s2165_s28 = smov 8  }
  0x14   :  { %37 = dma.hbm_to_vmem [thread:$0]  %s2467_s1, 256, %s32_s16, [#allocation6], %s2164_s27, %s2164_s27, %s2165_s28  }
  0x15   :  { %s2066_s7 = scalar_lea.hbm %s2466_s0, 256 }
  0x16   :  { %p2067_p8 = scmp.ne.s32.totalorder %s2466_s0, %s2066_s7  ;;  %p2070_p9 = scmp.lt.u32.totalorder %s2066_s7, %s2466_s0 }
  0x18   :  { %p2072_p10 = pnand %p2070_p9, %p2067_p8 }
  0x1a   :  { %2075 = shalt.err (!%p2072_p10)
}
  0x1b   :  { %s2076_s12 = scalar_lea.vmem %s2208_s18, 256  ;;  %p2081_p12 = scmp.lt.s32.totalorder %s2208_s18, %s2208_s18 }
  0x1c   :  { %p2077_p11 = scmp.ne.s32.totalorder %s2208_s18, %s2076_s12  ;;  %p2082_p13 = scmp.lt.s32.totalorder %s2076_s12, %s2076_s12 }
  0x1e   :  { %p2083_p0 = por %p2082_p13, %p2081_p12 }
  0x20   :  { %p2084_p1 = pnand %p2083_p0, %p2077_p11 }
  0x22   :  { %2087 = shalt.err (!%p2084_p1)
}
  0x23   :  { %25 = dma.hbm_to_vmem [thread:$0]  %s2466_s0, 256, %s2208_s18, [#allocation3], %s2164_s27, %s2164_s27, %s2165_s28  }
  0x24   :  { %s2166_s14 = smov [#allocation7]   ;;  %s2088_s19 = scalar_lea.hbm %s2468_s2, 2688 }
  0x25   :  { %s43_s15 = sshll.u32 %s2166_s14, 4  ;;  %p2089_p2 = scmp.ne.s32.totalorder %s2468_s2, %s2088_s19  ;;  %s44_s15 = int_to_ptr.vmem [resolvable:$true] %s43_s15 }
  0x26   :  { %p2092_p3 = scmp.lt.u32.totalorder %s2088_s19, %s2468_s2 }
  0x28   :  { %p2094_p4 = pnand %p2092_p3, %p2089_p2 }
  0x2a   :  { %2097 = shalt.err (!%p2094_p4)
}
  0x2b   :  { %s2098_s24 = scalar_lea.vmem %s44_s15, 2688  ;;  %p2103_p6 = scmp.lt.s32.totalorder %s44_s15, %s44_s15 }
  0x2c   :  { %p2099_p5 = scmp.ne.s32.totalorder %s44_s15, %s2098_s24  ;;  %p2104_p7 = scmp.lt.s32.totalorder %s2098_s24, %s2098_s24 }
  0x2e   :  { %p2105_p8 = por %p2104_p7, %p2103_p6 }
  0x30   :  { %p2106_p9 = pnand %p2105_p8, %p2099_p5 }
  0x32   :  { %2109 = shalt.err (!%p2106_p9)
}
  0x33   :  { %49 = dma.hbm_to_vmem [thread:$0]  %s2468_s2, 2688, %s44_s15, [#allocation6], %s2164_s27, %s2164_s27, %s2165_s28  }
  0x34   :  { %2154 = dma.done.wait [#allocation3], 256  }
  0x35   :  { %2155 = vsyncadd [#allocation3], 4294967040 }
  0x36   :  { %2156 = dma.done.wait [#allocation6], 2944  }
  0x37   :  { %2157 = vsyncadd [#allocation6], 4294964352  ;;  %vm84_vm0 = vcmask 261120   ;;  %v63_v0 = vld [vmem:[#allocation7] sm:$0xff]  ;;  %v64_v1 = vld [vmem:[#allocation7 + $0x8] sm:$0xff]  ;;  %v80_v8 = vlaneseq  ;;  %vm172_vm1 = vcmask 64512  }
  0x38   :  { %v65_v2 = vld [vmem:[#allocation7 + $0x10] sm:$0xff]  ;;  %v1865_v3 = vpack.c.bf16 %v64_v1, %v63_v0  ;;  %v66_v4 = vld [vmem:[#allocation7 + $0x18] sm:$0xff]  ;;  %v2260_v5 = vld [vmem:[#allocation2] sm:$0xff]  ;;  %s2167_s2 = smov 120   ;;  %s2168_s25 = smov 96   ;;  %vm260_vm3 = vcmask 130048  }
  0x39   :  { %v1869_v6 = vpack.c.bf16 %v66_v4, %v65_v2  ;;  %1756 = vmatprep.mubr.msk.f32.mxu1 %vm84_vm0, %v2260_v5  ;;  %v2264_v7 = vld [vmem:[#allocation2 + $0x8] sm:$0xff]  ;;  %v2268_v9 = vshrl.u32 %v80_v8, 7  ;;  %v2271_v11 = vld [vmem:[#allocation7 + $0xa0] sm:$0xff]  ;;  %s2169_s26 = smov 88   ;;  %s2170_s29 = smov 112   ;;  %vm2293_vm2 = vmpackc.low %vm172_vm1, %vm172_vm1  ;;  %vm1488_vm4 = vcmask 523264  }
  0x3a   :  { %1866 = vmatprep.subr.bf16.mxu1 %v1865_v3  ;;  %s2171_s30 = smov 80   ;;  %v2315_v36 = vld [vmem:[#allocation5 + $0x8] sm:$0xff]  ;;  %v2317_v39 = vld [vmem:[#allocation5] sm:$0xff]  ;;  %s2172_s5 = smov 56   ;;  %vm288_vm5 = vcmask 326912   ;;  %vm498_vm6 = vcmask 130112  }
  0x3b   :  { %1868 = vmatpush3.bf16.msra.mxu1 %v1865_v3  ;;  %v82_v10 = vsub.s32 0, %v2268_v9  ;;  %s2173_s6 = smov 72   ;;  %s2174_s7 = smov 64   ;;  %vm504_vm7 = vcmask 392512   ;;  %vm875_vm8 = vcmask 195712   ;;  %vm881_vm9 = vcmask 458112  }
  0x3c   :  { %1870 = vmatprep.subr.bf16.mxu1 %v1869_v6  ;;  %s2175_s8 = smov 104   ;;  %s2176_s9 = smov 48   ;;  %vm1173_vm10 = vcmask 261312   ;;  %vm1179_vm11 = vcmask 523712  }
  0x3d   :  { %v83_v12 = vrot.slane %v2271_v11, %v82_v10  ;;  %s2177_s10 = smov 40   ;;  %s2178_s11 = smov 24  }
  0x3e   :  { %s2179_s12 = smov 32   ;;  %s2180_s1 = smov 16  }
  0x3f   :  { %1872 = vmatpush3.bf16.msra.mxu1 %v1869_v6  ;;  %s2181_s13 = smov [#allocation9]  }
  0x40   :  { %s1630_s14 = sshll.u32 %s2181_s13, 4  ;;  %s1631_s14 = int_to_ptr.vmem [resolvable:$true] %s1630_s14 }
  0x41   :  { %s2110_s15 = scalar_lea.vmem %s1631_s14, 128  ;;  %p2115_p11 = scmp.lt.s32.totalorder %s1631_s14, %s1631_s14 }
  0x42   :  { %1757 = vmatmul.mubr.msk.f32.vlgmr.msra.gmra.mrb[0].mxu1 %vm84_vm0, %v2264_v7  ;;  %p2111_p10 = scmp.ne.s32.totalorder %s1631_s14, %s2110_s15  ;;  %p2116_p12 = scmp.lt.s32.totalorder %s2110_s15, %s2110_s15 }
  0x44   :  { %p2117_p13 = por %p2116_p12, %p2115_p11 }
  0x46   :  { %p2118_p0 = pnand %p2117_p13, %p2111_p10 }
 0x115   :  { %v1758_v13 = vpop.f32.mrb[0].mxu1 }
 0x116   :  { %v2274_v14 = vadd.f32 %v1758_v13, %v83_v12  ;;  %v157_v15 = vpop.f32.mrb[1].mxu1 }
 0x117   :  { %v2276_v16 = vadd.f32 %v157_v15, %v83_v12 }
 0x119   :  { %377 = vrot.lane.b32.xlu1 %v2276_v16, %s2167_s2  ;;  %1763 = vmatprep.mubr.msk.f32.mxu1 %vm172_vm1, %v2276_v16  ;;  %v2283_v17 = vpack.i.bf16 %v2274_v14, %v2276_v16 }
 0x11b   :  { %1965 = vrot.lane.b32.xlu0 %v2283_v17, %s2168_s25 }
 0x11d   :  { %379 = vrot.lane.b32.xlu1 %v2274_v14, %s2167_s2 }
 0x11f   :  { %1970 = vrot.lane.b32.xlu0 %v2283_v17, %s2169_s26 }
 0x121   :  { %754 = vrot.lane.b32.xlu1 %v2276_v16, %s2170_s29 }
 0x123   :  { %1975 = vrot.lane.b32.xlu0 %v2283_v17, %s2171_s30 }
 0x127   :  { %756 = vrot.lane.b32.xlu0 %v2274_v14, %s2170_s29 }
 0x18b   :  { %v378_v28 = vpop.permute.xlu1 %377 }
 0x18d   :  { %v1966_v18 = vpop.permute.xlu0 %1965 }
 0x18e   :  { %v1968_v19 = vunpack.i.h.bf16 %v1966_v18  ;;  %v1967_v20 = vunpack.i.l.bf16 %v1966_v18 }
 0x18f   :  { %v380_v32 = vpop.permute.xlu1 %379 }
 0x190   :  { %v1873_v22 = vpack.c.bf16 %v1968_v19, %v1967_v20 }
 0x191   :  { %v1971_v23 = vpop.permute.xlu0 %1970 }
 0x192   :  { %v1973_v24 = vunpack.i.h.bf16 %v1971_v23  ;;  %v1972_v25 = vunpack.i.l.bf16 %v1971_v23  ;;  %1875 = vmatprep.subr.msk.bf16.mxu1 %vm2293_vm2, %v1873_v22 }
 0x193   :  { %1878 = vmatpush3.bf16.xpose.msk.msra.mxu1 %vm2293_vm2, %v1873_v22  ;;  %v755_v33 = vpop.permute.xlu1 %754 }
 0x194   :  { %v1883_v26 = vpack.c.bf16 %v1973_v24, %v1972_v25 }
 0x195   :  { %v1976_v27 = vpop.permute.xlu0 %1975 }
 0x196   :  { %v1978_v29 = vunpack.i.h.bf16 %v1976_v27  ;;  %v1977_v30 = vunpack.i.l.bf16 %v1976_v27  ;;  %1885 = vmatprep.subr.msk.bf16.mxu1 %vm2293_vm2, %v1883_v26 }
 0x198   :  { %v1893_v31 = vpack.c.bf16 %v1978_v29, %v1977_v30 }
 0x199   :  { %v757_v34 = vpop.permute.xlu0 %756 }
 0x19a   :  { %1764 = vmatmul.mubr.msk.f32.vlgmr.msra.gmra.mrb[2].mxu1 %vm172_vm1, %v2274_v14 }
 0x19b   :  { %1888 = vmatpush3.bf16.xpose.msk.msra.mxu1 %vm2293_vm2, %v1883_v26  ;;  %1777 = vmatprep.mubr.msk.f32.mxu1 %vm172_vm1, %v378_v28 }
 0x19c   :  { %1895 = vmatprep.subr.msk.bf16.mxu1 %vm2293_vm2, %v1893_v31 }
 0x1a2   :  { %1778 = vmatmul.mubr.msk.f32.vlgmr.msra.gmra.mrb[4].mxu1 %vm172_vm1, %v380_v32 }
 0x1a3   :  { %1898 = vmatpush3.bf16.xpose.msk.msra.mxu1 %vm2293_vm2, %v1893_v31  ;;  %1801 = vmatprep.mubr.msk.f32.mxu1 %vm172_vm1, %v755_v33 }
 0x1aa   :  { %1802 = vmatmul.mubr.msk.f32.vlgmr.msra.gmra.mrb[6].mxu1 %vm172_vm1, %v757_v34 }
 0x26d   :  { %v1765_v35 = vpop.f32.mrb[2].mxu1 }
 0x26e   :  { %v257_v37 = vmul.f32 0.35355338, %v1765_v35  ;;  %v247_v38 = vpop.f32.mrb[3].mxu1 }
 0x26f   :  { %v256_v40 = vmul.f32 0.35355338, %v247_v38 }
 0x270   :  { %v259_v41 = vadd.f32 %v257_v37, %v2315_v36 }
 0x271   :  { %v258_v42 = vadd.f32 %v256_v40, %v2317_v39 }
 0x272   :  { %v264_v43 = vsel %vm260_vm3, %v259_v41, -inf }
 0x273   :  { %265 = vmax.xlane.f32.xlu0 %v264_v43  ;;  %v261_v44 = vsel %vm260_vm3, %v258_v42, -inf }
 0x274   :  { %262 = vmax.xlane.f32.xlu1 %v261_v44 }
 0x275   :  { %v1779_v45 = vpop.f32.mrb[4].mxu1 }
 0x276   :  { %v469_v46 = vmul.f32 0.35355338, %v1779_v45  ;;  %v459_v47 = vpop.f32.mrb[5].mxu1 }
 0x277   :  { %v468_v48 = vmul.f32 0.35355338, %v459_v47 }
 0x278   :  { %v471_v49 = vadd.f32 %v469_v46, %v2315_v36 }
 0x279   :  { %v470_v50 = vadd.f32 %v468_v48, %v2317_v39 }
 0x27a   :  { %v475_v51 = vsel %vm260_vm3, %v471_v49, -inf }
 0x27b   :  { %476 = vmax.xlane.f32.xlu1 %v475_v51  ;;  %v472_v52 = vsel %vm260_vm3, %v470_v50, -inf }
 0x27c   :  { %473 = vmax.xlane.f32.xlu0 %v472_v52 }
 0x27d   :  { %v1803_v53 = vpop.f32.mrb[6].mxu1 }
 0x27e   :  { %v836_v54 = vpop.f32.mrb[7].mxu1  ;;  %v846_v19 = vmul.f32 0.35355338, %v1803_v53 }
 0x27f   :  { %v845_v18 = vmul.f32 0.35355338, %v836_v54 }
 0x280   :  { %v848_v22 = vadd.f32 %v846_v19, %v2315_v36 }
 0x281   :  { %v847_v20 = vadd.f32 %v845_v18, %v2317_v39 }
 0x282   :  { %v852_v24 = vsel %vm260_vm3, %v848_v22, -inf }
 0x283   :  { %v849_v23 = vsel %vm260_vm3, %v847_v20, -inf }
 0x300   :  { %v266_v55 = vpop.xlane.xlu0 %265 }
 0x301   :  { %v268_v56 = vsub.f32 %v259_v41, %v266_v55  ;;  %v263_v57 = vpop.xlane.xlu1 %262 }
 0x302   :  { %v267_v58 = vsub.f32 %v258_v42, %v263_v57 }
 0x303   :  { %v271_v59 = vmul.f32 1.442695, %v268_v56 }
 0x304   :  { %v269_v60 = vmul.f32 1.442695, %v267_v58 }
 0x305   :  { %2004 = vpow2.f32 %v271_v59  ;;  %v591_v59 = vld [vmem:[#allocation7 + $0x28] sm:$0xff] }
 0x306   :  { %2006 = vpow2.f32 %v269_v60  ;;  %v376_v60 = vld [vmem:[#allocation7 + $0x20] sm:$0xff] }
 0x308   :  { %v477_v61 = vpop.xlane.xlu1 %476 }
 0x309   :  { %v479_v62 = vsub.f32 %v471_v49, %v477_v61  ;;  %v474_v63 = vpop.xlane.xlu0 %473 }
 0x30a   :  { %v478_v0 = vsub.f32 %v470_v50, %v474_v63 }
 0x30b   :  { %v482_v1 = vmul.f32 1.442695, %v479_v62 }
 0x30c   :  { %v480_v2 = vmul.f32 1.442695, %v478_v0 }
 0x30d   :  { %2008 = vpow2.f32 %v482_v1 }
 0x30e   :  { %2010 = vpow2.f32 %v480_v2 }
 0x30f   :  { %v2327_v3 = vpop.eup %2004 }
 0x310   :  { %v2007_v4 = vpop.eup %2006  ;;  %v276_v6 = vsel %vm260_vm3, %v2327_v3, 0.0 }
 0x311   :  { %277 = vadd.xlane.f32.xlu1 %v276_v6  ;;  %v273_v8 = vsel %vm260_vm3, %v2007_v4, 0.0 }
 0x312   :  { %274 = vadd.xlane.f32.xlu0 %v273_v8 }
 0x317   :  { %v2332_v10 = vpop.eup %2008 }
 0x318   :  { %v2011_v12 = vpop.eup %2010  ;;  %v487_v13 = vsel %vm260_vm3, %v2332_v10, 0.0 }
 0x319   :  { %488 = vadd.xlane.f32.xlu1 %v487_v13  ;;  %v484_v15 = vsel %vm260_vm3, %v2011_v12, 0.0 }
 0x31a   :  { %485 = vadd.xlane.f32.xlu0 %v484_v15 }
 0x32a   :  { %1985 = vrot.lane.b32.xlu1 %v2283_v17, %s2172_s5 }
 0x32e   :  { %1990 = vrot.lane.b32.xlu1 %v2283_v17, %s2173_s6 }
 0x330   :  { %1980 = vrot.lane.b32.xlu0 %v2283_v17, %s2174_s7 }
 0x332   :  { %1054 = vrot.lane.b32.xlu1 %v2274_v14, %s2175_s8 }
 0x334   :  { %1052 = vrot.lane.b32.xlu0 %v2276_v16, %s2175_s8 }
 0x353   :  { %850 = vmax.xlane.f32.xlu0 %v849_v23 }
 0x356   :  { %853 = vmax.xlane.f32.xlu1 %v852_v24 }
 0x367   :  { %1995 = vrot.lane.b32.xlu1 %v2283_v17, %s2176_s9 }
 0x36b   :  { %2000 = vrot.lane.b32.xlu1 %v2283_v17, %s2177_s10 }
 0x39e   :  { %v278_v16 = vpop.xlane.xlu1 %277 }
 0x39f   :  { %v275_v14 = vpop.xlane.xlu0 %274 }
 0x3a0   :  { %2012 = vrcp.f32 %v275_v14 }
 0x3a1   :  { %2014 = vrcp.f32 %v278_v16  ;;  %v968_v16 = vld [vmem:[#allocation7 + $0x30] sm:$0xff] }
 0x3a6   :  { %v489_v25 = vpop.xlane.xlu1 %488 }
 0x3a7   :  { %v486_v26 = vpop.xlane.xlu0 %485 }
 0x3a8   :  { %2016 = vrcp.f32 %v486_v26 }
 0x3a9   :  { %2018 = vrcp.f32 %v489_v25 }
 0x3aa   :  { %v2013_v27 = vpop.eup %2012  ;;  %v1986_v28 = vpop.permute.xlu1 %1985 }
 0x3ab   :  { %v1981_v29 = vpop.permute.xlu0 %1980  ;;  %v280_v30 = vmul.f32 %v2013_v27, %v2007_v4  ;;  %v1988_v31 = vunpack.i.h.bf16 %v1986_v28  ;;  %v1987_v32 = vunpack.i.l.bf16 %v1986_v28  ;;  %v2015_v37 = vpop.eup %2014 }
 0x3ac   :  { %v1983_v33 = vunpack.i.h.bf16 %v1981_v29  ;;  %v1982_v34 = vunpack.i.l.bf16 %v1981_v29  ;;  %v2354_v45 = vmul.f32 %v2015_v37, %v2327_v3 }
 0x3ad   :  { %283 = vst.msk [vmem:[#allocation9] sm:$0xff] %vm172_vm1, %v280_v30  ;;  %1770 = vmatprep.mubr.msk.f32.mxu0 %vm260_vm3, %v280_v30  ;;  %v1889_v42 = vpack.c.bf16 %v1988_v31, %v1987_v32 }
 0x3ae   :  { %v1991_v17 = vpop.permute.xlu1 %1990  ;;  %v1879_v35 = vpack.c.bf16 %v1983_v33, %v1982_v34 }
 0x3af   :  { %v1993_v38 = vunpack.i.h.bf16 %v1991_v17  ;;  %v1992_v40 = vunpack.i.l.bf16 %v1991_v17  ;;  %v1053_v41 = vpop.permute.xlu0 %1052 }
 0x3b0   :  { %1880 = vmatprep.subr.bf16.mxu0 %v1879_v35  ;;  %1820 = vmatprep.mubr.msk.f32.mxu1 %vm172_vm1, %v1053_v41  ;;  %v1266_v41 = vld [vmem:[#allocation7 + $0x38] sm:$0xff] }
 0x3b1   :  { %v1903_v43 = vpack.c.bf16 %v1993_v38, %v1992_v40  ;;  %1882 = vmatpush3.bf16.msra.mxu0 %v1879_v35 }
 0x3b2   :  { %v2017_v44 = vpop.eup %2016  ;;  %1890 = vmatprep.subr.bf16.mxu0 %v1889_v42  ;;  %v1055_v49 = vpop.permute.xlu1 %1054 }
 0x3b3   :  { %v2019_v46 = vpop.eup %2018  ;;  %1905 = vmatprep.subr.msk.bf16.mxu1 %vm2293_vm2, %v1903_v43  ;;  %v2358_v47 = vmul.f32 %v2017_v44, %v2011_v12 }
 0x3b4   :  { %1771 = vmatmul.mubr.msk.f32.vlgmr.msra.gmra.mrb[0].mxu0 %vm260_vm3, %v2354_v45  ;;  %1908 = vmatpush3.bf16.xpose.msk.msra.mxu1 %vm2293_vm2, %v1903_v43  ;;  %v2367_v48 = vmul.f32 %v2019_v46, %v2332_v10 }
 0x3b5   :  { %1892 = vmatpush3.bf16.msra.mxu0 %v1889_v42  ;;  %1784 = vmatprep.mubr.msk.f32.mxu0 %vm260_vm3, %v2358_v47 }
 0x3b6   :  { %1787 = vmatprep.subr.mxu0 %v591_v59 }
 0x3b8   :  { %1785 = vmatmul.mubr.msk.f32.vlgmr.msra.gmra.mrb[2].mxu0 %vm260_vm3, %v2367_v48 }
 0x3b9   :  { %1788 = vmatpush3.msra.mxu0 %v591_v59 }
 0x3ba   :  { %1792 = vmatprep.subr.mxu0 %v376_v60 }
 0x3bb   :  { %1821 = vmatmul.mubr.msk.f32.vlgmr.msra.gmra.mrb[8].mxu1 %vm172_vm1, %v1055_v49 }
 0x3e0   :  { %v851_v50 = vpop.xlane.xlu0 %850 }
 0x3e1   :  { %v855_v51 = vsub.f32 %v847_v20, %v851_v50 }
 0x3e3   :  { %v857_v52 = vmul.f32 1.442695, %v855_v51  ;;  %v854_v53 = vpop.xlane.xlu1 %853 }
 0x3e4   :  { %v856_v54 = vsub.f32 %v848_v22, %v854_v53  ;;  %v1352_v53 = vsub.s32 1, %v2268_v9 }
 0x3e5   :  { %2020 = vpow2.f32 %v857_v52 }
 0x3e6   :  { %v859_v21 = vmul.f32 1.442695, %v856_v54  ;;  %v1353_v54 = vrot.slane %v2271_v11, %v1352_v53 }
 0x3e7   :  { %v1996_v62 = vpop.permute.xlu1 %1995 }
 0x3e8   :  { %2022 = vpow2.f32 %v859_v21  ;;  %v1998_v2 = vunpack.i.h.bf16 %v1996_v62  ;;  %v1997_v3 = vunpack.i.l.bf16 %v1996_v62 }
 0x3ea   :  { %v1899_v8 = vpack.c.bf16 %v1998_v2, %v1997_v3 }
 0x3eb   :  { %v2001_v20 = vpop.permute.xlu1 %2000 }
 0x3ec   :  { %v2003_v25 = vunpack.i.h.bf16 %v2001_v20  ;;  %v2002_v26 = vunpack.i.l.bf16 %v2001_v20  ;;  %v73_v20 = vld [vmem:[#allocation7 + $0x70] sm:$0xff] }
 0x3ee   :  { %v1909_v28 = vpack.c.bf16 %v2003_v25, %v2002_v26  ;;  %v76_v25 = vld [vmem:[#allocation7 + $0x88] sm:$0xff] }
 0x3ef   :  { %v2021_v55 = vpop.eup %2020 }
 0x3f0   :  { %v861_v56 = vsel %vm260_vm3, %v2021_v55, 0.0 }
 0x3f1   :  { %862 = vadd.xlane.f32.xlu0 %v861_v56 }
 0x3f2   :  { %v2023_v57 = vpop.eup %2022 }
 0x3f3   :  { %v864_v58 = vsel %vm260_vm3, %v2023_v57, 0.0 }
 0x3f5   :  { %865 = vadd.xlane.f32.xlu0 %v864_v58 }
 0x47e   :  { %v863_v61 = vpop.xlane.xlu0 %862 }
 0x47f   :  { %2024 = vrcp.f32 %v863_v61 }
 0x482   :  { %v866_v0 = vpop.xlane.xlu0 %865 }
 0x483   :  { %2026 = vrcp.f32 %v866_v0 }
 0x487   :  { %v1772_v63 = vpop.f32.mrb[0].mxu0 }
 0x488   :  { %v367_v1 = vpop.f32.mrb[1].mxu0 }
 0x489   :  { %v2025_v18 = vpop.eup %2024 }
 0x48a   :  { %v2380_v14 = vmul.f32 %v2025_v18, %v2021_v55  ;;  %v71_v18 = vld [vmem:[#allocation7 + $0x60] sm:$0xff] }
 0x48b   :  { %v1786_v4 = vpop.f32.mrb[2].mxu0 }
 0x48c   :  { %v582_v6 = vpop.f32.mrb[3].mxu0 }
 0x48d   :  { %1789 = vmatprep.mubr.msk.f32.mxu0 %vm172_vm1, %v582_v6  ;;  %v2027_v24 = vpop.eup %2026 }
 0x48e   :  { %1790 = vmatmul.mubr.msk.f32.vlgmr.msra.gmra.mrb[4].mxu0 %vm172_vm1, %v1786_v4  ;;  %v1822_v10 = vpop.f32.mrb[8].mxu1  ;;  %v870_v27 = vmul.f32 %v2027_v24, %v2023_v57 }
 0x48f   :  { %1793 = vmatpush3.msra.mxu0 %v376_v60  ;;  %1794 = vmatprep.mubr.msk.f32.mxu0 %vm172_vm1, %v367_v1  ;;  %v1134_v12 = vpop.f32.mrb[9].mxu1  ;;  %v1144_v13 = vmul.f32 0.35355338, %v1822_v10 }
 0x490   :  { %1900 = vmatprep.subr.bf16.mxu0 %v1899_v8  ;;  %v1143_v15 = vmul.f32 0.35355338, %v1134_v12  ;;  %v69_v12 = vld [vmem:[#allocation7 + $0x50] sm:$0xff] }
 0x491   :  { %v1146_v23 = vadd.f32 %v1144_v13, %v2315_v36  ;;  %v70_v13 = vld [vmem:[#allocation7 + $0x58] sm:$0xff] }
 0x492   :  { %v1145_v19 = vadd.f32 %v1143_v15, %v2317_v39  ;;  %v1917_v15 = vpack.c.bf16 %v70_v13, %v69_v12 }
 0x493   :  { %v1150_v39 = vsel %vm260_vm3, %v1146_v23, -inf }
 0x494   :  { %v1147_v22 = vsel %vm260_vm3, %v1145_v19, -inf }
 0x495   :  { %1148 = vmax.xlane.f32.xlu0 %v1147_v22 }
 0x496   :  { %1795 = vmatmul.mubr.msk.f32.vlgmr.msra.gmra.mrb[4].mxu0 %vm172_vm1, %v1772_v63 }
 0x497   :  { %1902 = vmatpush3.bf16.msra.mxu0 %v1899_v8  ;;  %1808 = vmatprep.mubr.msk.f32.mxu0 %vm260_vm3, %v2380_v14  ;;  %v67_v8 = vld [vmem:[#allocation7 + $0x40] sm:$0xff] }
 0x498   :  { %1811 = vmatprep.subr.mxu0 %v968_v16 }
 0x499   :  { %1151 = vmax.xlane.f32.xlu0 %v1150_v39 }
 0x49a   :  { %1809 = vmatmul.mubr.msk.f32.vlgmr.msra.gmra.mrb[6].mxu0 %vm260_vm3, %v870_v27 }
 0x49b   :  { %1812 = vmatpush3.msra.mxu0 %v968_v16  ;;  %v75_v16 = vld [vmem:[#allocation7 + $0x80] sm:$0xff] }
 0x49c   :  { %1910 = vmatprep.subr.bf16.mxu0 %v1909_v28  ;;  %v1929_v26 = vpack.c.bf16 %v76_v25, %v75_v16 }
 0x522   :  { %v1149_v36 = vpop.xlane.xlu0 %1148 }
 0x523   :  { %v1153_v29 = vsub.f32 %v1145_v19, %v1149_v36  ;;  %v72_v19 = vld [vmem:[#allocation7 + $0x68] sm:$0xff] }
 0x524   :  { %v1921_v22 = vpack.c.bf16 %v72_v19, %v71_v18 }
 0x525   :  { %v1155_v30 = vmul.f32 1.442695, %v1153_v29 }
 0x526   :  { %v1152_v31 = vpop.xlane.xlu0 %1151 }
 0x527   :  { %2028 = vpow2.f32 %v1155_v30  ;;  %v1154_v32 = vsub.f32 %v1146_v23, %v1152_v31  ;;  %v74_v23 = vld [vmem:[#allocation7 + $0x78] sm:$0xff]  ;;  %v1387_v31 = vsub.s32 4, %v2268_v9 }
 0x528   :  { %v1925_v24 = vpack.c.bf16 %v74_v23, %v73_v20 }
 0x529   :  { %v1157_v33 = vmul.f32 1.442695, %v1154_v32  ;;  %v1393_v32 = vsub.s32 5, %v2268_v9 }
 0x52b   :  { %2030 = vpow2.f32 %v1157_v33  ;;  %v1388_v33 = vrot.slane %v2271_v11, %v1387_v31 }
 0x531   :  { %v2029_v34 = vpop.eup %2028 }
 0x532   :  { %v1159_v17 = vsel %vm260_vm3, %v2029_v34, 0.0 }
 0x533   :  { %1160 = vadd.xlane.f32.xlu0 %v1159_v17 }
 0x535   :  { %v2031_v35 = vpop.eup %2030 }
 0x536   :  { %v1162_v37 = vsel %vm260_vm3, %v2031_v35, 0.0 }
 0x537   :  { %1163 = vadd.xlane.f32.xlu0 %v1162_v37 }
 0x56d   :  { %v1810_v38 = vpop.f32.mrb[6].mxu0 }
 0x56e   :  { %v959_v40 = vpop.f32.mrb[7].mxu0 }
 0x56f   :  { %1813 = vmatprep.mubr.msk.f32.mxu0 %vm172_vm1, %v959_v40 }
 0x570   :  { %1814 = vmatmul.mubr.msk.f32.vlgmr.msra.gmra.mrb[4].mxu0 %vm172_vm1, %v1810_v38 }
 0x571   :  { %1912 = vmatpush3.bf16.msra.mxu0 %v1909_v28 }
 0x572   :  { %1830 = vmatprep.subr.mxu0 %v1266_v41 }
 0x5c0   :  { %v1161_v42 = vpop.xlane.xlu0 %1160 }
 0x5c1   :  { %2032 = vrcp.f32 %v1161_v42 }
 0x5c4   :  { %v1164_v43 = vpop.xlane.xlu0 %1163 }
 0x5c5   :  { %2034 = vrcp.f32 %v1164_v43 }
 0x5cb   :  { %v2033_v44 = vpop.eup %2032 }
 0x5cc   :  { %v2391_v46 = vmul.f32 %v2033_v44, %v2029_v34  ;;  %v77_v44 = vld [vmem:[#allocation7 + $0x90] sm:$0xff] }
 0x5ce   :  { %1827 = vmatprep.mubr.msk.f32.mxu0 %vm260_vm3, %v2391_v46 }
 0x5cf   :  { %v2035_v49 = vpop.eup %2034 }
 0x5d0   :  { %v1168_v50 = vmul.f32 %v2035_v49, %v2031_v35  ;;  %v1394_v35 = vrot.slane %v2271_v11, %v1393_v32  ;;  %v78_v49 = vld [vmem:[#allocation7 + $0x98] sm:$0xff] }
 0x5d2   :  { %1828 = vmatmul.mubr.msk.f32.vlgmr.msra.gmra.mrb[8].mxu0 %vm260_vm3, %v1168_v50 }
 0x5d3   :  { %1831 = vmatpush3.msra.mxu0 %v1266_v41 }
 0x5d4   :  { %1922 = vmatprep.subr.bf16.mxu0 %v1921_v22 }
 0x6a5   :  { %v1829_v51 = vpop.f32.mrb[8].mxu0 }
 0x6a6   :  { %v1257_v52 = vpop.f32.mrb[9].mxu0 }
 0x6a7   :  { %1832 = vmatprep.mubr.msk.f32.mxu0 %vm172_vm1, %v1257_v52 }
 0x6a8   :  { %1833 = vmatmul.mubr.msk.f32.vlgmr.msra.gmra.mrb[4].mxu0 %vm172_vm1, %v1829_v51  ;;  %v1399_v51 = vsub.s32 2, %v2268_v9 }
 0x6a9   :  { %1924 = vmatpush3.bf16.msra.mxu0 %v1921_v22 }
 0x6aa   :  { %1926 = vmatprep.subr.bf16.mxu0 %v1925_v24  ;;  %v1400_v52 = vrot.slane %v2271_v11, %v1399_v51 }
 0x6ad   :  { %1928 = vmatpush3.bf16.msra.mxu0 %v1925_v24 }
 0x6ae   :  { %1930 = vmatprep.subr.bf16.mxu0 %v1929_v26 }
 0x6b1   :  { %1932 = vmatpush3.bf16.msra.mxu0 %v1929_v26 }
 0x77b   :  { %v1834_v21 = vpop.f32.mrb[4].mxu0 }
 0x77c   :  { %v1355_v55 = vadd.f32 %v1834_v21, %v1353_v54  ;;  %v1339_v56 = vpop.f32.mrb[5].mxu0 }
 0x77d   :  { %v1354_v57 = vadd.f32 %v1353_v54, %v1339_v56 }
 0x77e   :  { %v1357_v58 = vadd.f32 %v1355_v55, %v2264_v7 }
 0x77f   :  { %v1356_v59 = vadd.f32 %v1354_v57, %v2260_v5 }
 0x780   :  { %v1361_v60 = vsel %vm84_vm0, %v1357_v58, 0.0 }
 0x781   :  { %1362 = vadd.xlane.f32.xlu1 %v1361_v60  ;;  %v1358_v61 = vsel %vm84_vm0, %v1356_v59, 0.0 }
 0x782   :  { %1359 = vadd.xlane.f32.xlu0 %v1358_v61 }
 0x792   :  { %495 = vrot.lane.b32.xlu1 %v2358_v47, %s2165_s28  ;;  %v68_v47 = vld [vmem:[#allocation7 + $0x48] sm:$0xff] }
 0x793   :  { %v1913_v10 = vpack.c.bf16 %v68_v47, %v67_v8 }
 0x795   :  { %1914 = vmatprep.subr.bf16.mxu1 %v1913_v10 }
 0x796   :  { %878 = vrot.lane.b32.xlu1 %v870_v27, %s2177_s10  ;;  %1916 = vmatpush3.bf16.msra.mxu1 %v1913_v10 }
 0x797   :  { %1918 = vmatprep.subr.bf16.mxu1 %v1917_v15 }
 0x79a   :  { %1176 = vrot.lane.b32.xlu1 %v1168_v50, %s2176_s9  ;;  %1920 = vmatpush3.bf16.msra.mxu1 %v1917_v15  ;;  %v1933_v50 = vpack.c.bf16 %v78_v49, %v77_v44 }
 0x79c   :  { %1934 = vmatprep.subr.bf16.mxu0 %v1933_v50 }
 0x79d   :  { %1936 = vmatpush3.bf16.msra.mxu0 %v1933_v50 }
 0x80e   :  { %v1363_v62 = vpop.xlane.xlu1 %1362 }
 0x80f   :  { %v1366_v63 = vmul.f32 0.03125, %v1363_v62  ;;  %v1360_v0 = vpop.xlane.xlu0 %1359 }
 0x810   :  { %v1365_v1 = vmul.f32 0.03125, %v1360_v0 }
 0x811   :  { %v1368_v7 = vsub.f32 %v1357_v58, %v1366_v63  ;;  %v1486_v58 = vsub.s32 3, %v2268_v9 }
 0x812   :  { %v1367_v2 = vsub.f32 %v1356_v59, %v1365_v1  ;;  %v496_v12 = vpop.permute.xlu1 %495 }
 0x813   :  { %v1370_v4 = vmul.f32 %v1368_v7, %v1368_v7  ;;  %v1487_v59 = vrot.slane %v2271_v11, %v1486_v58 }
 0x814   :  { %v1369_v5 = vmul.f32 %v1367_v2, %v1367_v2 }
 0x815   :  { %v1374_v6 = vsel %vm84_vm0, %v1370_v4, 0.0 }
 0x816   :  { %v1371_v3 = vsel %vm84_vm0, %v1369_v5, 0.0  ;;  %v879_v16 = vpop.permute.xlu1 %878 }
 0x817   :  { %1372 = vadd.xlane.f32.xlu0 %v1371_v3 }
 0x81b   :  { %1375 = vadd.xlane.f32.xlu0 %v1374_v6 }
 0x8a4   :  { %v1373_v27 = vpop.xlane.xlu0 %1372 }
 0x8a5   :  { %v1377_v39 = vmul.f32 0.03125, %v1373_v27  ;;  %v1606_v27 = vsub.s32 7, %v2268_v9 }
 0x8a7   :  { %v1379_v28 = vadd.f32 1e-05, %v1377_v39  ;;  %v1177_v39 = vpop.permute.xlu1 %1176 }
 0x8a8   :  { %v1376_v36 = vpop.xlane.xlu0 %1375 }
 0x8a9   :  { %2036 = vrsqrt.f32 %v1379_v28  ;;  %v1378_v29 = vmul.f32 0.03125, %v1376_v36 }
 0x8ab   :  { %v1380_v30 = vadd.f32 1e-05, %v1378_v29 }
 0x8ad   :  { %2038 = vrsqrt.f32 %v1380_v30 }
 0x8b3   :  { %v2037_v34 = vpop.eup %2036 }
 0x8b4   :  { %v1383_v17 = vmul.f32 %v2037_v34, %v1367_v2 }
 0x8b6   :  { %v1389_v37 = vmul.f32 %v1388_v33, %v1383_v17 }
 0x8b7   :  { %v2039_v38 = vpop.eup %2038 }
 0x8b8   :  { %v1384_v40 = vmul.f32 %v2039_v38, %v1368_v7  ;;  %v1395_v41 = vadd.f32 %v1394_v35, %v1389_v37 }
 0x8ba   :  { %v1390_v42 = vmul.f32 %v1388_v33, %v1384_v40  ;;  %1843 = vmatprep.mubr.msk.f32.mxu1 %vm84_vm0, %v1395_v41 }
 0x8bc   :  { %v1396_v43 = vadd.f32 %v1394_v35, %v1390_v42 }
 0x8be   :  { %1844 = vmatmul.mubr.msk.f32.vlgmr.msra.gmra.mrb[10].mxu1 %vm84_vm0, %v1396_v43 }
 0x991   :  { %v1845_v53 = vpop.f32.mrb[10].mxu1 }
 0x992   :  { %v1479_v54 = vadd.f32 %v1845_v53, %v1400_v52  ;;  %v1473_v21 = vpop.f32.mrb[11].mxu1 }
 0x993   :  { %v1474_v55 = vadd.f32 %v1473_v21, %v1400_v52 }
 0x994   :  { %v1483_v57 = vmax.f32 %v1479_v54, 0.0 }
 0x995   :  { %v1482_v56 = vmax.f32 %v1474_v55, 0.0 }
 0x997   :  { %1862 = vmatprep.mubr.msk.f32.mxu0 %vm1488_vm4, %v1482_v56 }
 0x998   :  { %1863 = vmatmul.mubr.msk.f32.vlgmr.msra.gmra.mrb[10].mxu0 %vm1488_vm4, %v1483_v57 }
 0xa6b   :  { %v1864_v60 = vpop.f32.mrb[10].mxu0 }
 0xa6c   :  { %v1561_v61 = vpop.f32.mrb[11].mxu0  ;;  %v1567_v62 = vadd.f32 %v1864_v60, %v1487_v59 }
 0xa6d   :  { %v1562_v63 = vadd.f32 %v1561_v61, %v1487_v59 }
 0xa6e   :  { %v1571_v7 = vadd.f32 %v1567_v62, %v1396_v43 }
 0xa6f   :  { %v1570_v0 = vadd.f32 %v1562_v63, %v1395_v41 }
 0xa70   :  { %v1575_v2 = vsel %vm84_vm0, %v1571_v7, 0.0 }
 0xa71   :  { %v1572_v1 = vsel %vm84_vm0, %v1570_v0, 0.0 }
 0xa72   :  { %1573 = vadd.xlane.f32.xlu0 %v1572_v1 }
 0xa76   :  { %1576 = vadd.xlane.f32.xlu0 %v1575_v2 }
 0xa8c   :  { %285 = vrot.lane.b32.xlu0 %v2354_v45, %s2178_s11 }
 0xa90   :  { %501 = vrot.lane.b32.xlu0 %v2367_v48, %s2179_s12 }
 0xaff   :  { %v1574_v5 = vpop.xlane.xlu0 %1573 }
 0xb00   :  { %v1578_v3 = vmul.f32 0.03125, %v1574_v5 }
 0xb02   :  { %v2424_v8 = vsub.f32 %v1570_v0, %v1578_v3 }
 0xb03   :  { %v1577_v4 = vpop.xlane.xlu0 %1576 }
 0xb04   :  { %v1579_v6 = vmul.f32 0.03125, %v1577_v4  ;;  %v1582_v48 = vmul.f32 %v2424_v8, %v2424_v8 }
 0xb06   :  { %v1581_v47 = vsub.f32 %v1571_v7, %v1579_v6  ;;  %v1584_v18 = vsel %vm84_vm0, %v1582_v48, 0.0 }
 0xb07   :  { %v286_v10 = vpop.permute.xlu0 %285 }
 0xb08   :  { %289 = vst.msk [vmem:[#allocation9] sm:$0xff] %vm288_vm5, %v286_v10  ;;  %v1583_v13 = vmul.f32 %v1581_v47, %v1581_v47 }
 0xb09   :  { %499 = vst.msk [vmem:[#allocation9] sm:$0xff] %vm498_vm6, %v496_v12 }
 0xb0a   :  { %v1587_v45 = vsel %vm84_vm0, %v1583_v13, 0.0 }
 0xb0b   :  { %1588 = vadd.xlane.f32.xlu0 %v1587_v45  ;;  %v502_v15 = vpop.permute.xlu0 %501 }
 0xb0c   :  { %505 = vst.msk [vmem:[#allocation9] sm:$0xff] %vm504_vm7, %v502_v15 }
 0xb0f   :  { %1585 = vadd.xlane.f32.xlu0 %v1584_v18 }
 0xb25   :  { %872 = vrot.lane.b32.xlu0 %v2380_v14, %s2180_s1  ;;  %v1600_v14 = vsub.s32 6, %v2268_v9 }
 0xb27   :  { %v1601_v28 = vrot.slane %v2271_v11, %v1600_v14 }
 0xb29   :  { %1170 = vrot.lane.b32.xlu0 %v2391_v46, %s2178_s11 }
 0xb98   :  { %v1589_v19 = vpop.xlane.xlu0 %1588 }
 0xb99   :  { %v1591_v20 = vmul.f32 0.03125, %v1589_v19 }
 0xb9b   :  { %v1593_v22 = vadd.f32 1e-05, %v1591_v20 }
 0xb9c   :  { %v1586_v23 = vpop.xlane.xlu0 %1585 }
 0xb9d   :  { %2040 = vrsqrt.f32 %v1593_v22  ;;  %v1590_v24 = vmul.f32 0.03125, %v1586_v23 }
 0xb9f   :  { %v1592_v25 = vadd.f32 1e-05, %v1590_v24 }
 0xba0   :  { %v873_v26 = vpop.permute.xlu0 %872 }
 0xba1   :  { %2042 = vrsqrt.f32 %v1592_v25  ;;  %876 = vst.msk [vmem:[#allocation9] sm:$0xff] %vm875_vm8, %v873_v26 }
 0xba2   :  { %882 = vst.msk [vmem:[#allocation9] sm:$0xff] %vm881_vm9, %v879_v16 }
 0xba4   :  { %v1171_v46 = vpop.permute.xlu0 %1170 }
 0xba5   :  { %1174 = vst.msk [vmem:[#allocation9] sm:$0xff] %vm1173_vm10, %v1171_v46 }
 0xba6   :  { %1180 = vst.msk [vmem:[#allocation9] sm:$0xff] %vm1179_vm11, %v1177_v39 }
 0xba7   :  { %v2041_v36 = vpop.eup %2040 }
 0xba8   :  { %2121 = shalt.err (!%p2118_p0)
}
 0xba9   :  { %s2122_s19 = scalar_lea.hbm %s2470_s4, 128 }
 0xbaa   :  { %p2123_p1 = scmp.ne.s32.totalorder %s2470_s4, %s2122_s19  ;;  %p2126_p2 = scmp.lt.u32.totalorder %s2122_s19, %s2470_s4 }
 0xbac   :  { %p2128_p3 = pnand %p2126_p2, %p2123_p1 }
 0xbae   :  { %2131 = shalt.err (!%p2128_p3)
}
 0xbaf   :  { %1633 = dma.vmem_to_hbm [thread:$0]  %s1631_s14, 128, %s2470_s4, [#allocation10]   ;;  %v1597_v9 = vmul.f32 %v2041_v36, %v1581_v47  ;;  %v1607_v29 = vrot.slane %v2271_v11, %v1606_v27  ;;  %v2043_v31 = vpop.eup %2042 }
 0xbb0   :  { %v1596_v32 = vmul.f32 %v2043_v31, %v2424_v8  ;;  %s2182_s18 = smov [#allocation8]  }
 0xbb1   :  { %v1603_v30 = vmul.f32 %v1601_v28, %v1597_v9  ;;  %s1617_s2 = sshll.u32 %s2182_s18, 4  ;;  %s1618_s2 = int_to_ptr.vmem [resolvable:$true] %s1617_s2 }
 0xbb2   :  { %v1602_v34 = vmul.f32 %v1601_v28, %v1596_v32  ;;  %s2132_s25 = scalar_lea.vmem %s1618_s2, 256  ;;  %p2137_p5 = scmp.lt.s32.totalorder %s1618_s2, %s1618_s2 }
 0xbb3   :  { %v1609_v33 = vadd.f32 %v1607_v29, %v1603_v30  ;;  %p2133_p4 = scmp.ne.s32.totalorder %s1618_s2, %s2132_s25  ;;  %p2138_p6 = scmp.lt.s32.totalorder %s2132_s25, %s2132_s25 }
 0xbb4   :  { %v1608_v17 = vadd.f32 %v1607_v29, %v1602_v34 }
 0xbb5   :  { %1611 = vst.msk [vmem:[#allocation8 + $0x8] sm:$0xff] %vm84_vm0, %v1609_v33  ;;  %p2139_p7 = por %p2138_p6, %p2137_p5 }
 0xbb6   :  { %1610 = vst.msk [vmem:[#allocation8] sm:$0xff] %vm84_vm0, %v1608_v17 }
 0xbb7   :  { %p2140_p8 = pnand %p2139_p7, %p2133_p4 }
 0xbb9   :  { %2143 = shalt.err (!%p2140_p8)
}
 0xbba   :  { %s2144_s29 = scalar_lea.hbm %s2469_s3, 256 }
 0xbbb   :  { %p2145_p9 = scmp.ne.s32.totalorder %s2469_s3, %s2144_s29  ;;  %p2148_p10 = scmp.lt.u32.totalorder %s2144_s29, %s2469_s3 }
 0xbbd   :  { %p2150_p11 = pnand %p2148_p10, %p2145_p9 }
 0xbbf   :  { %2153 = shalt.err (!%p2150_p11)
}
 0xbc0   :  { %1623 = dma.vmem_to_hbm [thread:$0]  %s1618_s2, 256, %s2469_s3, [#allocation4], %s2164_s27, %s2164_s27, %s2165_s28  }
 0xbc1   :  { %2158 = dma.done.wait [#allocation4], 256  }
 0xbc2   :  { %2159 = vsyncadd [#allocation4], 4294967040 }
 0xbc3   :  { %2160 = dma.done.wait [#allocation10], 128  }
 0xbc4   :  { %2161 = vsyncadd [#allocation10], 4294967168 }
 0xbc5   :  { %1640 = vsyncpa [#allocation3], 1 }
 0xbc6   :  { %1641 = vsyncpa [#allocation6], 1 }
 0xbc7   :  { %1642 = vsyncpa [#allocation4], 1 }
 0xbc8   :  { %1643 = vsyncpa [#allocation10], 1 }

</bundles_post_ra>
